<compile_context>
chip_gen: v7x
topology: tpu7x:2x2x1
jax: 0.10.0
libtpu: 0.0.40
codegen_flags: <defaults>
</compile_context>

<pallas_src>
import functools

import jax
import jax.numpy as jnp
import numpy as np
from jax import lax
from jax.experimental import pallas as pl
from jax.experimental.pallas import tpu as pltpu

N_BINS = 15
NB_PAD = 128  # bins padded to a full lane width


def _cdiv(a, b):
    return -(-a // b)


def _ece_kernel(lowers_ref, uppers_ref, logits_ref, target_ref, out_ref, *,
                n_rows, tile_m, tiles_per_split, chunk, needs_mask):
    s = pl.program_id(0)   # "parallel" split (v7x megacore)
    i = pl.program_id(1)   # "arbitrary" reduction over tiles within the split

    @pl.when(i == 0)
    def _():
        out_ref[...] = jnp.zeros_like(out_ref)

    lowers = lowers_ref[...]                      # (1, 128) f32
    uppers = uppers_ref[...]                      # (1, 128) f32
    tile_row0 = (s * tiles_per_split + i) * tile_m
    n_chunks = tile_m // chunk

    def body(c, acc):
        start = pl.multiple_of(c * chunk, chunk)
        logits = logits_ref[pl.ds(start, chunk), :].astype(jnp.float32)  # (chunk, C)
        tgt = target_ref[pl.ds(start, chunk), :]                          # (chunk, 1) i32
        C = logits.shape[-1]

        # softmax max == confidence: exp(0) / sum exp(x - max) = 1 / denom
        mx = jnp.max(logits, axis=-1, keepdims=True)                      # (chunk, 1)
        denom = jnp.sum(jnp.exp(logits - mx), axis=-1, keepdims=True)
        conf = pl.reciprocal(denom, approx=False)                         # (chunk, 1)

        # argmax with torch.max tie-breaking (first max index)
        col = lax.broadcasted_iota(jnp.int32, logits.shape, 1)
        cand = jnp.where(logits == mx, col, C)
        pred = jnp.min(cand, axis=-1, keepdims=True)                      # (chunk, 1)
        acc_flag = (pred == tgt).astype(jnp.float32)                      # (chunk, 1)

        # per-bin membership (lane n_bins = "totals" lane that always matches)
        in_bin = jnp.logical_and(conf > lowers, conf <= uppers)           # (chunk, 128)
        in_bin = in_bin.astype(jnp.float32)

        # hi/lo split of conf keeps the MXU contraction f32-accurate even if
        # the f32 matmul is lowered to bf16 passes.
        conf_hi = conf.astype(jnp.bfloat16).astype(jnp.float32)
        conf_lo = conf - conf_hi

        fcol = lax.broadcasted_iota(jnp.int32, (chunk, 8), 1)
        rows = jnp.where(fcol == 0, 1.0,
               jnp.where(fcol == 1, conf_hi,
               jnp.where(fcol == 2, conf_lo,
               jnp.where(fcol == 3, acc_flag, 0.0))))                     # (chunk, 8)

        if needs_mask:  # static branch: only emitted when padding rows exist
            ridx = lax.broadcasted_iota(jnp.int32, (chunk, 1), 0)
            valid = ((tile_row0 + start + ridx) < n_rows).astype(jnp.float32)
            rows = rows * valid

        # One MXU contraction replaces three XLU reductions + two (chunk,128)
        # VPU multiplies:  result[f, b] = sum_m rows[m, f] * in_bin[m, b]
        partial = lax.dot_general(rows, in_bin,
                                  (((0,), (0,)), ((), ())),
                                  preferred_element_type=jnp.float32)     # (8, 128)
        return acc + partial

    acc0 = jnp.zeros((8, NB_PAD), jnp.float32)
    acc = lax.fori_loop(0, n_chunks, body, acc0, unroll=True)
    out_ref[...] += acc


@functools.partial(jax.jit, static_argnames=("n_bins", "tile_m"))
def ece_loss(logits, target, n_bins=N_BINS, tile_m=512):
    """Pallas implementation of ECELoss.forward.

    Returns (ece[1], confidences.mean(), accuracies.mean()) like the PyTorch module.
    """
    N, C = logits.shape
    assert n_bins + 1 <= NB_PAD
    elem = jnp.dtype(logits.dtype).itemsize

    # ---- tile selection: biggest tile whose double-buffered logits slab fits a
    #      generation-safe VMEM budget (v7x has only 64 MiB physical VMEM) ----
    dbl_buf_budget = 16 << 20                                   # bytes for 2x logits tile
    max_rows_by_vmem = max(128, dbl_buf_budget // max(1, 2 * C * elem))
    tm = min(tile_m, max_rows_by_vmem, ((N + 127) // 128) * 128)
    tm = max(128, (tm // 128) * 128)                            # sublane/bf16 friendly
    chunk = 256 if (tm % 256 == 0) else 128                     # bounds live vregs

    # ---- grid: leading "parallel" split uses both TensorCores on v7x ----
    tiles_total = _cdiv(N, tm)
    n_split = 2 if tiles_total >= 2 else 1
    tiles_per_split = _cdiv(tiles_total, n_split)
    padded_N = n_split * tiles_per_split * tm
    needs_mask = padded_N != N

    # bin boundaries (same as torch.linspace(0, 1, n_bins + 1))
    boundaries = jnp.linspace(0.0, 1.0, n_bins + 1, dtype=jnp.float32)
    lowers = jnp.full((1, NB_PAD), 2.0, jnp.float32).at[0, :n_bins].set(boundaries[:-1])
    uppers = jnp.full((1, NB_PAD), 2.0, jnp.float32).at[0, :n_bins].set(boundaries[1:])
    # lane `n_bins` is a "totals" lane every valid sample falls into
    lowers = lowers.at[0, n_bins].set(-1.0)
    uppers = uppers.at[0, n_bins].set(2.0)

    # native-dtype logits: no wrapper cast (halves HBM traffic for bf16 inputs)
    logits_p = logits
    target2d = target.astype(jnp.int32).reshape(N, 1)
    if needs_mask:
        logits_p = jnp.pad(logits_p, ((0, padded_N - N), (0, 0)))
        target2d = jnp.pad(target2d, ((0, padded_N - N), (0, 0)))

    tile_bytes = tm * C * elem
    vmem_limit = int(min(40 << 20, max(16 << 20, 2 * tile_bytes + (8 << 20))))

    kernel = functools.partial(
        _ece_kernel, n_rows=N, tile_m=tm, tiles_per_split=tiles_per_split,
        chunk=chunk, needs_mask=needs_mask)

    stats = pl.pallas_call(
        kernel,
        out_shape=jax.ShapeDtypeStruct((n_split, 8, NB_PAD), jnp.float32),
        grid_spec=pltpu.PrefetchScalarGridSpec(
            num_scalar_prefetch=0,
            grid=(n_split, tiles_per_split),
            in_specs=[
                pl.BlockSpec((1, NB_PAD), lambda s, i: (0, 0)),      # bin lowers
                pl.BlockSpec((1, NB_PAD), lambda s, i: (0, 0)),      # bin uppers
                pl.BlockSpec((tm, C), lambda s, i: (s * tiles_per_split + i, 0)),
                pl.BlockSpec((tm, 1), lambda s, i: (s * tiles_per_split + i, 0)),
            ],
            # one resident (8,128) accumulator slab per split / per core
            out_specs=pl.BlockSpec((None, 8, NB_PAD), lambda s, i: (s, 0, 0)),
        ),
        compiler_params=pltpu.CompilerParams(
            dimension_semantics=("parallel", "arbitrary"),
            vmem_limit_bytes=vmem_limit),
    )(lowers, uppers, logits_p, target2d)

    slab = jnp.sum(stats, axis=0)                 # (8, 128): combine the split slabs
    counts = slab[0, :n_bins]
    conf_sums = slab[1, :n_bins] + slab[2, :n_bins]
    acc_sums = slab[3, :n_bins]
    tot_conf = slab[1, n_bins] + slab[2, n_bins]
    tot_acc = slab[3, n_bins]

    n = jnp.float32(N)
    prop = counts / n
    safe = jnp.maximum(counts, 1.0)
    # Matches the PyTorch forward exactly: NO abs() around the per-bin gap,
    # and empty bins are skipped.
    per_bin = jnp.where(counts > 0.0,
                        (conf_sums / safe - acc_sums / safe) * prop,
                        0.0)
    ece = jnp.sum(per_bin).reshape(1)
    return ece, tot_conf / n, tot_acc / n


def _ece_reference(logits, target, n_bins=N_BINS):
    """Pure-JAX reference mirroring the PyTorch forward."""
    softmaxes = jax.nn.softmax(logits, axis=-1)
    confidences = jnp.max(softmaxes, axis=-1)
    predictions = jnp.argmax(softmaxes, axis=-1)
    accuracies = (predictions == target).astype(jnp.float32)
    boundaries = np.linspace(0.0, 1.0, n_bins + 1)
    ece = 0.0
    for lo, hi in zip(boundaries[:-1], boundaries[1:]):
        in_bin = (confidences > lo) & (confidences <= hi)
        prop = jnp.mean(in_bin.astype(jnp.float32))
        cnt = jnp.sum(in_bin)
        acc_in = jnp.sum(jnp.where(in_bin, accuracies, 0.0)) / jnp.maximum(cnt, 1)
        conf_in = jnp.sum(jnp.where(in_bin, confidences, 0.0)) / jnp.maximum(cnt, 1)
        ece = ece + jnp.where(cnt > 0, (conf_in - acc_in) * prop, 0.0)
    return (jnp.reshape(ece, (1,)),
            jnp.mean(confidences),
            jnp.mean(accuracies.astype(jnp.float32)))


if __name__ == "__main__":
    key = jax.random.PRNGKey(0)
    k1, k2 = jax.random.split(key)

    # Small shapes consistent with the module: a batch of logits + class targets.
    N, C = 128, 16
    logits = jax.random.normal(k1, (N, C), dtype=jnp.float32) * 3.0
    target = jax.random.randint(k2, (N,), 0, C, dtype=jnp.int32)

    ece, conf_mean, acc_mean = ece_loss(logits, target)
    jax.block_until_ready((ece, conf_mean, acc_mean))

    ece_r, conf_r, acc_r = _ece_reference(logits, target)
    assert np.allclose(np.asarray(ece), np.asarray(ece_r), atol=5e-5), (ece, ece_r)
    assert np.allclose(np.asarray(conf_mean), np.asarray(conf_r), atol=5e-5)
    assert np.allclose(np.asarray(acc_mean), np.asarray(acc_r), atol=5e-5)

    # Second check: exercises the padded-last-tile mask and the 2-way
    # "parallel" split path (v7x megacore layout).
    N2, C2 = 1000, 16
    k3, k4 = jax.random.split(jax.random.PRNGKey(0), 2)
    logits2 = jax.random.normal(k3, (N2, C2), dtype=jnp.float32) * 3.0
    target2 = jax.random.randint(k4, (N2,), 0, C2, dtype=jnp.int32)
    out2 = ece_loss(logits2, target2)
    jax.block_until_ready(out2)
    ref2 = _ece_reference(logits2, target2)
    for a, b in zip(out2, ref2):
        assert np.allclose(np.asarray(a), np.asarray(b), atol=5e-5), (a, b)

    print("KERNEL_OK")
</pallas_src>

<mosaic_0001>
module attributes {stable_mosaic.version = 11 : i64} {
  func.func @_ece_kernel(%arg0: i32, %arg1: i32, %arg2: memref<1x128xf32, #tpu.memory_space<vmem>>, %arg3: memref<1x128xf32, #tpu.memory_space<vmem>>, %arg4: memref<128x16xf32, #tpu.memory_space<vmem>>, %arg5: memref<128x1xi32, #tpu.memory_space<vmem>>, %arg6: memref<1x8x128xf32, #tpu.memory_space<vmem>>) attributes {dimension_semantics = [#tpu.dimension_semantics<parallel>, #tpu.dimension_semantics<arbitrary>], iteration_bounds = array<i64: 1, 1>, scalar_prefetch = 0 : i64, scratch_operands = 0 : i64, tpu.core_type = #tpu.core_type<tc>, window_params = [{pipeline_mode = #tpu.pipeline_mode<synchronous>, transform_indices = @transform_0, window_bounds = array<i64: 1, 128>}, {pipeline_mode = #tpu.pipeline_mode<synchronous>, transform_indices = @transform_1, window_bounds = array<i64: 1, 128>}, {transform_indices = @transform_2, window_bounds = array<i64: 128, 16>}, {transform_indices = @transform_3, window_bounds = array<i64: 128, 1>}, {transform_indices = @transform_4, window_bounds = array<i64: 1, 8, 128>}]} {
    %c0_i32 = arith.constant 0 : i32
    %0 = arith.cmpi eq, %arg1, %c0_i32 : i32
    %1 = arith.extui %0 : i1 to i32
    %c0_i32_0 = arith.constant 0 : i32
    %2 = arith.cmpi ne, %1, %c0_i32_0 : i32
    scf.if %2 {
      %cst_21 = arith.constant 0.000000e+00 : f32
      %71 = vector.broadcast %cst_21 : f32 to vector<8x128xf32>
      %c0_22 = arith.constant 0 : index
      %c0_23 = arith.constant 0 : index
      %c0_24 = arith.constant 0 : index
      %72 = vector.load %arg6[%c0_22, %c0_23, %c0_24] : memref<1x8x128xf32, #tpu.memory_space<vmem>>, vector<1x8x128xf32>
      %73 = vector.shape_cast %72 : vector<1x8x128xf32> to vector<8x128xf32>
      %74 = vector.shape_cast %71 : vector<8x128xf32> to vector<1x8x128xf32>
      tpu.vector_store %arg6[%c0_22, %c0_23, %c0_24], %74 {strides = array<i32>} : memref<1x8x128xf32, #tpu.memory_space<vmem>>, vector<1x8x128xf32>,
    } else {
    }
    %c0 = arith.constant 0 : index
    %c0_1 = arith.constant 0 : index
    %3 = vector.load %arg2[%c0, %c0_1] : memref<1x128xf32, #tpu.memory_space<vmem>>, vector<1x128xf32>
    %c0_2 = arith.constant 0 : index
    %c0_3 = arith.constant 0 : index
    %4 = vector.load %arg3[%c0_2, %c0_3] : memref<1x128xf32, #tpu.memory_space<vmem>>, vector<1x128xf32>
    %cst = arith.constant 0.000000e+00 : f32
    %5 = vector.broadcast %cst : f32 to vector<8x128xf32>
    %c0_i32_4 = arith.constant 0 : i32
    %c128_i32 = arith.constant 128 : i32
    %6 = arith.muli %c0_i32_4, %c128_i32 : i32
    %7 = tpu.assume_multiple %6, 128 : i32
    %8 = arith.index_cast %7 : i32 to index
    %c0_5 = arith.constant 0 : index
    %9 = vector.load %arg4[%8, %c0_5] : memref<128x16xf32, #tpu.memory_space<vmem>>, vector<128x16xf32>
    %10 = arith.index_cast %7 : i32 to index
    %c0_6 = arith.constant 0 : index
    %11 = vector.load %arg5[%10, %c0_6] : memref<128x1xi32, #tpu.memory_space<vmem>>, vector<128x1xi32>
    %cst_7 = arith.constant dense<0xFF800000> : vector<128xf32>
    %12 = vector.multi_reduction <maximumf>, %9, %cst_7 [1] : vector<128x16xf32> to vector<128xf32>
    %13 = vector.shape_cast %12 : vector<128xf32> to vector<128x1xf32>
    %14 = vector.broadcast %13 : vector<128x1xf32> to vector<128x16xf32>
    %15 = arith.subf %9, %14 : vector<128x16xf32>
    %16 = math.exp %15 : vector<128x16xf32>
    %cst_8 = arith.constant dense<0.000000e+00> : vector<128xf32>
    %17 = vector.multi_reduction <add>, %16, %cst_8 [1] : vector<128x16xf32> to vector<128xf32>
    %18 = vector.shape_cast %17 : vector<128xf32> to vector<128x1xf32>
    %19 = tpu.reciprocal %18 : vector<128x1xf32> -> vector<128x1xf32>
    %20 = tpu.iota {dimensions = array<i32: 1>} : vector<128x16xi32>
    %21 = vector.broadcast %13 : vector<128x1xf32> to vector<128x16xf32>
    %22 = arith.cmpf oeq, %9, %21 : vector<128x16xf32>
    %c16_i32 = arith.constant 16 : i32
    %23 = vector.broadcast %c16_i32 : i32 to vector<128x16xi32>
    %24 = arith.select %22, %20, %23 : vector<128x16xi1>, vector<128x16xi32>
    %cst_9 = arith.constant dense<2147483647> : vector<128xi32>
    %25 = vector.multi_reduction <minsi>, %24, %cst_9 [1] : vector<128x16xi32> to vector<128xi32>
    %26 = vector.shape_cast %25 : vector<128xi32> to vector<128x1xi32>
    %27 = arith.cmpi eq, %26, %11 : vector<128x1xi32>
    %28 = arith.extui %27 : vector<128x1xi1> to vector<128x1xi32>
    %29 = arith.sitofp %28 : vector<128x1xi32> to vector<128x1xf32>
    %30 = vector.broadcast %19 : vector<128x1xf32> to vector<128x128xf32>
    %31 = vector.broadcast %3 : vector<1x128xf32> to vector<128x128xf32>
    %32 = arith.cmpf ogt, %30, %31 : vector<128x128xf32>
    %33 = vector.broadcast %19 : vector<128x1xf32> to vector<128x128xf32>
    %34 = vector.broadcast %4 : vector<1x128xf32> to vector<128x128xf32>
    %35 = arith.cmpf ole, %33, %34 : vector<128x128xf32>
    %36 = arith.andi %32, %35 : vector<128x128xi1>
    %37 = arith.extui %36 : vector<128x128xi1> to vector<128x128xi32>
    %38 = arith.sitofp %37 : vector<128x128xi32> to vector<128x128xf32>
    %39 = arith.truncf %19 : vector<128x1xf32> to vector<128x1xbf16>
    %40 = arith.extf %39 : vector<128x1xbf16> to vector<128x1xf32>
    %41 = arith.subf %19, %40 : vector<128x1xf32>
    %42 = tpu.iota {dimensions = array<i32: 1>} : vector<128x8xi32>
    %c0_i32_10 = arith.constant 0 : i32
    %43 = vector.broadcast %c0_i32_10 : i32 to vector<128x8xi32>
    %44 = arith.cmpi eq, %42, %43 : vector<128x8xi32>
    %c1_i32 = arith.constant 1 : i32
    %45 = vector.broadcast %c1_i32 : i32 to vector<128x8xi32>
    %46 = arith.cmpi eq, %42, %45 : vector<128x8xi32>
    %c2_i32 = arith.constant 2 : i32
    %47 = vector.broadcast %c2_i32 : i32 to vector<128x8xi32>
    %48 = arith.cmpi eq, %42, %47 : vector<128x8xi32>
    %c3_i32 = arith.constant 3 : i32
    %49 = vector.broadcast %c3_i32 : i32 to vector<128x8xi32>
    %50 = arith.cmpi eq, %42, %49 : vector<128x8xi32>
    %cst_11 = arith.constant 0.000000e+00 : f32
    %51 = vector.shape_cast %29 : vector<128x1xf32> to vector<128x1xf32>
    %52 = vector.broadcast %51 : vector<128x1xf32> to vector<128x8xf32>
    %53 = vector.broadcast %cst_11 : f32 to vector<128x8xf32>
    %54 = arith.select %50, %52, %53 : vector<128x8xi1>, vector<128x8xf32>
    %55 = vector.shape_cast %41 : vector<128x1xf32> to vector<128x1xf32>
    %56 = vector.broadcast %55 : vector<128x1xf32> to vector<128x8xf32>
    %57 = arith.select %48, %56, %54 : vector<128x8xi1>, vector<128x8xf32>
    %58 = vector.shape_cast %40 : vector<128x1xf32> to vector<128x1xf32>
    %59 = vector.broadcast %58 : vector<128x1xf32> to vector<128x8xf32>
    %60 = arith.select %46, %59, %57 : vector<128x8xi1>, vector<128x8xf32>
    %cst_12 = arith.constant 1.000000e+00 : f32
    %61 = vector.broadcast %cst_12 : f32 to vector<128x8xf32>
    %62 = arith.select %44, %61, %60 : vector<128x8xi1>, vector<128x8xf32>
    %cst_13 = arith.constant dense<0.000000e+00> : vector<8x128xf32>
    %63 = tpu.matmul %62, %38, %cst_13 {dimension_numbers = #tpu.dot_dimension_numbers<[0], [0], [1], [1], [0, 1, 1, 1], [], []>} : vector<128x8xf32>, vector<128x128xf32>, vector<8x128xf32> -> vector<8x128xf32>
    %64 = arith.addf %5, %63 : vector<8x128xf32>
    %c1_i32_14 = arith.constant 1 : i32
    %c0_15 = arith.constant 0 : index
    %c0_16 = arith.constant 0 : index
    %c0_17 = arith.constant 0 : index
    %65 = vector.load %arg6[%c0_15, %c0_16, %c0_17] : memref<1x8x128xf32, #tpu.memory_space<vmem>>, vector<1x8x128xf32>
    %66 = vector.shape_cast %65 : vector<1x8x128xf32> to vector<8x128xf32>
    %67 = arith.addf %66, %64 : vector<8x128xf32>
    %c0_18 = arith.constant 0 : index
    %c0_19 = arith.constant 0 : index
    %c0_20 = arith.constant 0 : index
    %68 = vector.load %arg6[%c0_18, %c0_19, %c0_20] : memref<1x8x128xf32, #tpu.memory_space<vmem>>, vector<1x8x128xf32>
    %69 = vector.shape_cast %68 : vector<1x8x128xf32> to vector<8x128xf32>
    %70 = vector.shape_cast %67 : vector<8x128xf32> to vector<1x8x128xf32>
    tpu.vector_store %arg6[%c0_18, %c0_19, %c0_20], %70 {strides = array<i32>} : memref<1x8x128xf32, #tpu.memory_space<vmem>>, vector<1x8x128xf32>,
    return
  }
  func.func @transform_0(%arg0: i32, %arg1: i32) -> (i32, i32) {
    %c0_i32 = arith.constant 0 : i32
    %c0_i32_0 = arith.constant 0 : i32
    %c0_i32_1 = arith.constant 0 : i32
    return %c0_i32, %c0_i32_0 : i32, i32
  }
  func.func @transform_1(%arg0: i32, %arg1: i32) -> (i32, i32) {
    %c0_i32 = arith.constant 0 : i32
    %c0_i32_0 = arith.constant 0 : i32
    %c0_i32_1 = arith.constant 0 : i32
    return %c0_i32, %c0_i32_0 : i32, i32
  }
  func.func @transform_2(%arg0: i32, %arg1: i32) -> (i32, i32) {
    %c1_i32 = arith.constant 1 : i32
    %0 = arith.muli %arg0, %c1_i32 : i32
    %1 = arith.addi %0, %arg1 : i32
    %c0_i32 = arith.constant 0 : i32
    %c0_i32_0 = arith.constant 0 : i32
    return %1, %c0_i32 : i32, i32
  }
  func.func @transform_3(%arg0: i32, %arg1: i32) -> (i32, i32) {
    %c1_i32 = arith.constant 1 : i32
    %0 = arith.muli %arg0, %c1_i32 : i32
    %1 = arith.addi %0, %arg1 : i32
    %c0_i32 = arith.constant 0 : i32
    %c0_i32_0 = arith.constant 0 : i32
    return %1, %c0_i32 : i32, i32
  }
  func.func @transform_4(%arg0: i32, %arg1: i32) -> (i32, i32, i32) {
    %c0_i32 = arith.constant 0 : i32
    %c0_i32_0 = arith.constant 0 : i32
    %c0_i32_1 = arith.constant 0 : i32
    return %arg0, %c0_i32, %c0_i32_0 : i32, i32, i32
  }
}

</mosaic_0001>

<bundles_post_ra>
// kernel: ece_loss.1
= control target key start
LH: loop header
LB: loop body
LE: loop exit
PB: predicated region body
PF: predicated region fallthrough
CT: control target
= control target key end

     0   :  { %vm100_vm0 = vcmask 130048   ;;  %v261_v32 = vlaneseq  ;;  %s2091_s2 = inlined_call_operand.vmem [shape: f32[128,16], index: 2, kind: input, shape index: {}]   ;;  %s2092_s0 = inlined_call_operand.vmem [shape: f32[1,128], index: 0, kind: input, shape index: {}]   ;;  %s2093_s1 = inlined_call_operand.vmem [shape: f32[1,128], index: 1, kind: input, shape index: {}]   ;;  %s2094_s3 = inlined_call_operand.vmem [shape: s32[128,1], index: 3, kind: input, shape index: {}]   ;;  %s2095_s4 = inlined_call_operand.vmem [shape: f32[1,8,128], index: 4, kind: output, shape index: {}]  }
   0x1   :  { %v1225_v0 = vld [vmem:[%s2091_s2] sm:$0xff]  ;;  %v1230_v1 = vld [vmem:[%s2091_s2 + $0x10] sm:$0xff]  ;;  %v1235_v2 = vld [vmem:[%s2091_s2 + $0x8] sm:$0xff] }
   0x2   :  { %v101_v3 = vsel %vm100_vm0, %v1225_v0, -inf  ;;  %v107_v4 = vsel %vm100_vm0, %v1230_v1, -inf  ;;  %v1244_v5 = vld [vmem:[%s2091_s2 + $0x18] sm:$0xff]  ;;  %v104_v6 = vsel %vm100_vm0, %v1235_v2, -inf  ;;  %v1253_v8 = vld [vmem:[%s2091_s2 + $0x20] sm:$0xff]  ;;  %v1258_v9 = vld [vmem:[%s2091_s2 + $0x28] sm:$0xff] }
   0x3   :  { %102 = vmax.xlane.f32.xlu0 %v101_v3  ;;  %108 = vmax.xlane.f32.xlu1 %v107_v4  ;;  %v110_v7 = vsel %vm100_vm0, %v1244_v5, -inf  ;;  %v113_v10 = vsel %vm100_vm0, %v1253_v8, -inf  ;;  %v116_v11 = vsel %vm100_vm0, %v1258_v9, -inf  ;;  %v1267_v12 = vld [vmem:[%s2091_s2 + $0x30] sm:$0xff]  ;;  %v1272_v13 = vld [vmem:[%s2091_s2 + $0x38] sm:$0xff]  ;;  %v1281_v16 = vld [vmem:[%s2091_s2 + $0x40] sm:$0xff] }
   0x4   :  { %v119_v14 = vsel %vm100_vm0, %v1267_v12, -inf  ;;  %v122_v15 = vsel %vm100_vm0, %v1272_v13, -inf  ;;  %v1286_v17 = vld [vmem:[%s2091_s2 + $0x48] sm:$0xff]  ;;  %v125_v18 = vsel %vm100_vm0, %v1281_v16, -inf  ;;  %v1295_v20 = vld [vmem:[%s2091_s2 + $0x50] sm:$0xff]  ;;  %v1300_v21 = vld [vmem:[%s2091_s2 + $0x58] sm:$0xff] }
   0x5   :  { %v128_v19 = vsel %vm100_vm0, %v1286_v17, -inf  ;;  %v131_v22 = vsel %vm100_vm0, %v1295_v20, -inf  ;;  %v134_v23 = vsel %vm100_vm0, %v1300_v21, -inf  ;;  %v1309_v24 = vld [vmem:[%s2091_s2 + $0x60] sm:$0xff]  ;;  %v1314_v25 = vld [vmem:[%s2091_s2 + $0x68] sm:$0xff]  ;;  %v1323_v28 = vld [vmem:[%s2091_s2 + $0x70] sm:$0xff] }
   0x6   :  { %v137_v26 = vsel %vm100_vm0, %v1309_v24, -inf  ;;  %v140_v27 = vsel %vm100_vm0, %v1314_v25, -inf  ;;  %v1328_v29 = vld [vmem:[%s2091_s2 + $0x78] sm:$0xff]  ;;  %v143_v30 = vsel %vm100_vm0, %v1323_v28, -inf  ;;  %v1334_v33 = vand.u32 127, %v261_v32 }
   0x7   :  { %105 = vmax.xlane.f32.xlu0 %v104_v6  ;;  %111 = vmax.xlane.f32.xlu1 %v110_v7  ;;  %v146_v31 = vsel %vm100_vm0, %v1328_v29, -inf }
   0xb   :  { %114 = vmax.xlane.f32.xlu0 %v113_v10  ;;  %117 = vmax.xlane.f32.xlu1 %v116_v11 }
   0xf   :  { %120 = vmax.xlane.f32.xlu0 %v119_v14  ;;  %123 = vmax.xlane.f32.xlu1 %v122_v15 }
  0x13   :  { %126 = vmax.xlane.f32.xlu0 %v125_v18  ;;  %129 = vmax.xlane.f32.xlu1 %v128_v19 }
  0x17   :  { %132 = vmax.xlane.f32.xlu0 %v131_v22  ;;  %135 = vmax.xlane.f32.xlu1 %v134_v23 }
  0x1b   :  { %138 = vmax.xlane.f32.xlu0 %v137_v26  ;;  %141 = vmax.xlane.f32.xlu1 %v140_v27 }
  0x1f   :  { %144 = vmax.xlane.f32.xlu0 %v143_v30  ;;  %147 = vmax.xlane.f32.xlu1 %v146_v31 }
  0x90   :  { %v1336_v34 = vpop.xlane.xlu0 %102  ;;  %v1338_v35 = vpop.xlane.xlu1 %108 }
  0x91   :  { %vm263_vm1 = vcmp.eq.f32.partialorder %v1225_v0, %v1336_v34  ;;  %vm265_vm2 = vcmp.eq.f32.partialorder %v1230_v1, %v1338_v35  ;;  %v149_v15 = vsub.f32 %v1225_v0, %v1336_v34  ;;  %v151_v22 = vsub.f32 %v1230_v1, %v1338_v35 }
  0x92   :  { %v279_v36 = vsel %vm263_vm1, %v1334_v33, 16  ;;  %v281_v37 = vsel %vm265_vm2, %v1334_v33, 16 }
  0x93   :  { %v1347_v38 = vsel %vm100_vm0, %v279_v36, 2147483647  ;;  %v1355_v42 = vsel %vm100_vm0, %v281_v37, 2147483647  ;;  %v165_v1 = vmul.f32 1.442695, %v149_v15 }
  0x94   :  { %v1349_v39 = vpop.xlane.xlu0 %105  ;;  %v1351_v40 = vpop.xlane.xlu1 %111  ;;  %v297_v41 = vshra.s32 %v1347_v38, 16  ;;  %v327_v46 = vshra.s32 %v1355_v42, 16  ;;  %v169_v36 = vmul.f32 1.442695, %v151_v22 }
  0x95   :  { %vm264_vm3 = vcmp.eq.f32.partialorder %v1235_v2, %v1349_v39  ;;  %vm266_vm4 = vcmp.eq.f32.partialorder %v1244_v5, %v1351_v40  ;;  %v150_v37 = vsub.f32 %v1235_v2, %v1349_v39  ;;  %1127 = vpow2.f32 %v165_v1 }
  0x96   :  { %v280_v43 = vsel %vm264_vm3, %v1334_v33, 16  ;;  %v1362_v44 = vcvt.s32.f32 %v297_v41  ;;  %v282_v45 = vsel %vm266_vm4, %v1334_v33, 16  ;;  %v1382_v52 = vcvt.s32.f32 %v327_v46 }
  0x97   :  { %v1372_v49 = vsel %vm100_vm0, %v280_v43, 2147483647  ;;  %v1377_v50 = vsel %vm100_vm0, %v282_v45, 2147483647  ;;  %1129 = vpow2.f32 %v169_v36 }
  0x98   :  { %300 = vmin.xlane.f32.xlu0 %v1362_v44  ;;  %v1367_v47 = vpop.xlane.xlu0 %114  ;;  %v1369_v48 = vpop.xlane.xlu1 %117  ;;  %v312_v54 = vshra.s32 %v1372_v49, 16  ;;  %v342_v57 = vshra.s32 %v1377_v50, 16 }
  0x99   :  { %vm267_vm5 = vcmp.eq.f32.partialorder %v1253_v8, %v1367_v47  ;;  %vm268_vm6 = vcmp.eq.f32.partialorder %v1258_v9, %v1369_v48  ;;  %v153_v2 = vsub.f32 %v1253_v8, %v1367_v47  ;;  %v154_v15 = vsub.f32 %v1258_v9, %v1369_v48 }
  0x9a   :  { %v283_v51 = vsel %vm267_vm5, %v1334_v33, 16  ;;  %v284_v53 = vsel %vm268_vm6, %v1334_v33, 16  ;;  %v1395_v59 = vcvt.s32.f32 %v312_v54  ;;  %v1406_v62 = vcvt.s32.f32 %v342_v57 }
  0x9b   :  { %v1393_v58 = vsel %vm100_vm0, %v283_v51, 2147483647  ;;  %v1400_v60 = vsel %vm100_vm0, %v284_v53, 2147483647  ;;  %v152_v57 = vsub.f32 %v1244_v5, %v1351_v40 }
  0x9c   :  { %330 = vmin.xlane.f32.xlu0 %v1382_v52  ;;  %v1387_v55 = vpop.xlane.xlu0 %120  ;;  %v1389_v56 = vpop.xlane.xlu1 %123  ;;  %315 = vmin.xlane.f32.xlu1 %v1395_v59  ;;  %v357_v63 = vshra.s32 %v1393_v58, 16  ;;  %v372_v6 = vshra.s32 %v1400_v60, 16 }
  0x9d   :  { %vm269_vm7 = vcmp.eq.f32.partialorder %v1267_v12, %v1387_v55  ;;  %vm270_vm8 = vcmp.eq.f32.partialorder %v1272_v13, %v1389_v56 }
  0x9e   :  { %v285_v61 = vsel %vm269_vm7, %v1334_v33, 16  ;;  %v286_v10 = vsel %vm270_vm8, %v1334_v33, 16  ;;  %v1418_v11 = vcvt.s32.f32 %v357_v63  ;;  %v1429_v18 = vcvt.s32.f32 %v372_v6 }
  0x9f   :  { %v1415_v7 = vsel %vm100_vm0, %v285_v61, 2147483647  ;;  %v1439_v27 = vsel %vm100_vm0, %v286_v10, 2147483647  ;;  %v167_v10 = vmul.f32 1.442695, %v150_v37 }
  0xa0   :  { %v1409_v3 = vpop.xlane.xlu0 %126  ;;  %v1411_v4 = vpop.xlane.xlu1 %129  ;;  %345 = vmin.xlane.f32.xlu1 %v1406_v62  ;;  %360 = vmin.xlane.f32.xlu0 %v1418_v11  ;;  %v387_v19 = vshra.s32 %v1415_v7, 16  ;;  %v402_v34 = vshra.s32 %v1439_v27, 16 }
  0xa1   :  { %vm271_vm9 = vcmp.eq.f32.partialorder %v1281_v16, %v1409_v3  ;;  %vm272_vm10 = vcmp.eq.f32.partialorder %v1286_v17, %v1411_v4  ;;  %1131 = vpow2.f32 %v167_v10  ;;  %v157_v10 = vsub.f32 %v1281_v16, %v1409_v3 }
  0xa2   :  { %v287_v14 = vsel %vm271_vm9, %v1334_v33, 16  ;;  %v288_v30 = vsel %vm272_vm10, %v1334_v33, 16  ;;  %v1445_v31 = vcvt.s32.f32 %v387_v19  ;;  %v1466_v51 = vcvt.s32.f32 %v402_v34 }
  0xa3   :  { %v1442_v0 = vsel %vm100_vm0, %v287_v14, 2147483647  ;;  %v1463_v45 = vsel %vm100_vm0, %v288_v30, 2147483647  ;;  %v171_v14 = vmul.f32 1.442695, %v152_v57  ;;  %v155_v34 = vsub.f32 %v1267_v12, %v1387_v55 }
  0xa4   :  { %v1434_v23 = vpop.xlane.xlu0 %132  ;;  %v1436_v26 = vpop.xlane.xlu1 %135  ;;  %375 = vmin.xlane.f32.xlu1 %v1429_v18  ;;  %390 = vmin.xlane.f32.xlu0 %v1445_v31  ;;  %v417_v35 = vshra.s32 %v1442_v0, 16  ;;  %v432_v39 = vshra.s32 %v1463_v45, 16  ;;  %v173_v30 = vmul.f32 1.442695, %v153_v2  ;;  %v175_v57 = vmul.f32 1.442695, %v154_v15 }
  0xa5   :  { %vm273_vm11 = vcmp.eq.f32.partialorder %v1295_v20, %v1434_v23  ;;  %vm274_vm12 = vcmp.eq.f32.partialorder %v1300_v21, %v1436_v26  ;;  %1133 = vpow2.f32 %v171_v14  ;;  %v156_v2 = vsub.f32 %v1272_v13, %v1389_v56  ;;  %v1128_v14 = vpop.eup %1127 }
  0xa6   :  { %v289_v32 = vsel %vm273_vm11, %v1334_v33, 16  ;;  %v290_v46 = vsel %vm274_vm12, %v1334_v33, 16  ;;  %v1468_v53 = vcvt.s32.f32 %v417_v35  ;;  %v1494_v47 = vcvt.s32.f32 %v432_v39  ;;  %v1130_v15 = vpop.eup %1129 }
  0xa7   :  { %v1471_v54 = vsel %vm100_vm0, %v289_v32, 2147483647  ;;  %v1491_v6 = vsel %vm100_vm0, %v290_v46, 2147483647  ;;  %1135 = vpow2.f32 %v173_v30  ;;  %v158_v13 = vsub.f32 %v1286_v17, %v1411_v4 }
  0xa8   :  { %v1458_v41 = vpop.xlane.xlu0 %138  ;;  %v1460_v43 = vpop.xlane.xlu1 %141  ;;  %405 = vmin.xlane.f32.xlu1 %v1466_v51  ;;  %420 = vmin.xlane.f32.xlu0 %v1468_v53  ;;  %v447_v5 = vshra.s32 %v1471_v54, 16  ;;  %v462_v32 = vshra.s32 %v1491_v6, 16  ;;  %1137 = vpow2.f32 %v175_v57  ;;  %v181_v30 = vmul.f32 1.442695, %v157_v10 }
  0xa9   :  { %vm275_vm13 = vcmp.eq.f32.partialorder %v1309_v24, %v1458_v41  ;;  %vm276_vm14 = vcmp.eq.f32.partialorder %v1314_v25, %v1460_v43  ;;  %v159_v16 = vsub.f32 %v1295_v20, %v1434_v23  ;;  %v197_v17 = vsel %vm100_vm0, %v1128_v14, 0.0 }
  0xaa   :  { %v291_v61 = vsel %vm275_vm13, %v1334_v33, 16  ;;  %v292_v8 = vsel %vm276_vm14, %v1334_v33, 16  ;;  %v1500_v19 = vcvt.s32.f32 %v447_v5  ;;  %v1518_v36 = vcvt.s32.f32 %v462_v32 }
  0xab   :  { %v1508_v1 = vsel %vm100_vm0, %v291_v61, 2147483647  ;;  %v1516_v35 = vsel %vm100_vm0, %v292_v8, 2147483647  ;;  %v177_v5 = vmul.f32 1.442695, %v155_v34  ;;  %v1132_v3 = vpop.eup %1131  ;;  %v160_v34 = vsub.f32 %v1300_v21, %v1436_v26 }
  0xac   :  { %v1486_v40 = vpop.xlane.xlu0 %144  ;;  %v1488_v63 = vpop.xlane.xlu1 %147  ;;  %435 = vmin.xlane.f32.xlu1 %v1494_v47  ;;  %450 = vmin.xlane.f32.xlu0 %v1500_v19  ;;  %v477_v48 = vshra.s32 %v1508_v1, 16  ;;  %v183_v32 = vmul.f32 1.442695, %v158_v13  ;;  %v200_v20 = vsel %vm100_vm0, %v1132_v3, 0.0 }
  0xad   :  { %vm277_vm15 = vcmp.eq.f32.partialorder %v1323_v28, %v1486_v40  ;;  %vm278_vm1 = vcmp.eq.f32.partialorder %v1328_v29, %v1488_v63  ;;  %v492_v29 = vshra.s32 %v1516_v35, 16  ;;  %1139 = vpow2.f32 %v177_v5 }
  0xae   :  { %v293_v22 = vsel %vm277_vm15, %v1334_v33, 16  ;;  %v294_v9 = vsel %vm278_vm1, %v1334_v33, 16  ;;  %v1524_v46 = vcvt.s32.f32 %v477_v48  ;;  %v203_v48 = vsel %vm100_vm0, %v1130_v15, 0.0 }
  0xaf   :  { %v1522_v37 = vsel %vm100_vm0, %v293_v22, 2147483647  ;;  %v1528_v55 = vsel %vm100_vm0, %v294_v9, 2147483647  ;;  %v1533_v39 = vcvt.s32.f32 %v492_v29  ;;  %v179_v22 = vmul.f32 1.442695, %v156_v2  ;;  %v1134_v4 = vpop.eup %1133 }
  0xb0   :  { %v507_v12 = vshra.s32 %v1522_v37, 16  ;;  %465 = vmin.xlane.f32.xlu1 %v1518_v36  ;;  %v522_v61 = vshra.s32 %v1528_v55, 16  ;;  %480 = vmin.xlane.f32.xlu0 %v1524_v46  ;;  %v185_v9 = vmul.f32 1.442695, %v159_v16  ;;  %v187_v23 = vmul.f32 1.442695, %v160_v34 }
  0xb1   :  { %1141 = vpow2.f32 %v179_v22  ;;  %v1136_v29 = vpop.eup %1135  ;;  %v206_v21 = vsel %vm100_vm0, %v1134_v4, 0.0  ;;  %v162_v5 = vsub.f32 %v1314_v25, %v1460_v43  ;;  %v163_v22 = vsub.f32 %v1323_v28, %v1486_v40 }
  0xb2   :  { %v1539_v8 = vcvt.s32.f32 %v507_v12  ;;  %v1544_v56 = vcvt.s32.f32 %v522_v61  ;;  %1143 = vpow2.f32 %v181_v30  ;;  %v161_v12 = vsub.f32 %v1309_v24, %v1458_v41  ;;  %v1138_v26 = vpop.eup %1137 }
  0xb3   :  { %1145 = vpow2.f32 %v183_v32  ;;  %v209_v57 = vsel %vm100_vm0, %v1136_v29, 0.0  ;;  %v212_v10 = vsel %vm100_vm0, %v1138_v26, 0.0  ;;  %v191_v15 = vmul.f32 1.442695, %v162_v5 }
  0xb4   :  { %495 = vmin.xlane.f32.xlu1 %v1533_v39  ;;  %510 = vmin.xlane.f32.xlu0 %v1539_v8  ;;  %1147 = vpow2.f32 %v185_v9  ;;  %v189_v61 = vmul.f32 1.442695, %v161_v12  ;;  %v193_v16 = vmul.f32 1.442695, %v163_v22  ;;  %v326_v26 = vand.u32 65535, %v1355_v42 }
  0xb5   :  { %1149 = vpow2.f32 %v187_v23  ;;  %v296_v23 = vand.u32 65535, %v1347_v38  ;;  %v341_v42 = vand.u32 65535, %v1377_v50  ;;  %v371_v22 = vand.u32 65535, %v1400_v60 }
  0xb6   :  { %1151 = vpow2.f32 %v189_v61  ;;  %v328_v5 = vcvt.s32.f32 %v326_v26  ;;  %v401_v60 = vand.u32 65535, %v1439_v27  ;;  %v431_v27 = vand.u32 65535, %v1463_v45 }
  0xb7   :  { %v1140_v2 = vpop.eup %1139  ;;  %1153 = vpow2.f32 %v191_v15  ;;  %v343_v15 = vcvt.s32.f32 %v341_v42 }
  0xb8   :  { %525 = vmin.xlane.f32.xlu1 %v1544_v56  ;;  %198 = vadd.xlane.f32.xlu0 %v197_v17  ;;  %v215_v24 = vsel %vm100_vm0, %v1140_v2, 0.0  ;;  %1155 = vpow2.f32 %v193_v16  ;;  %v1192_v17 = vmov 0.0|0.0   ;;  %v311_v2 = vand.u32 65535, %v1372_v49 }
  0xb9   :  { %1086 = vmatprep.subr.bf16.mxu0 %v1192_v17 }
  0xbb   :  { %v1142_v14 = vpop.eup %1141 }
  0xbc   :  { %201 = vadd.xlane.f32.xlu1 %v200_v20  ;;  %204 = vadd.xlane.f32.xlu0 %v203_v48  ;;  %v1144_v41 = vpop.eup %1143  ;;  %v218_v13 = vsel %vm100_vm0, %v1142_v14, 0.0  ;;  %v313_v14 = vcvt.s32.f32 %v311_v2 }
  0xbd   :  { %v1146_v30 = vpop.eup %1145  ;;  %v221_v25 = vsel %vm100_vm0, %v1144_v41, 0.0 }
  0xbe   :  { %v1148_v43 = vpop.eup %1147  ;;  %v224_v3 = vsel %vm100_vm0, %v1146_v30, 0.0 }
  0xbf   :  { %v1150_v32 = vpop.eup %1149  ;;  %v227_v34 = vsel %vm100_vm0, %v1148_v43, 0.0 }
  0xc0   :  { %207 = vadd.xlane.f32.xlu1 %v206_v21  ;;  %210 = vadd.xlane.f32.xlu0 %v209_v57  ;;  %v230_v28 = vsel %vm100_vm0, %v1150_v32, 0.0  ;;  %v1152_v40 = vpop.eup %1151  ;;  %v298_v21 = vcvt.s32.f32 %v296_v23  ;;  %v403_v32 = vcvt.s32.f32 %v401_v60 }
  0xc1   :  { %v233_v4 = vsel %vm100_vm0, %v1152_v40, 0.0  ;;  %v1154_v9 = vpop.eup %1153  ;;  %v433_v40 = vcvt.s32.f32 %v431_v27 }
  0xc2   :  { %v236_v48 = vsel %vm100_vm0, %v1154_v9, 0.0  ;;  %v1156_v29 = vpop.eup %1155 }
  0xc3   :  { %v239_v20 = vsel %vm100_vm0, %v1156_v29, 0.0 }
  0xc4   :  { %213 = vadd.xlane.f32.xlu1 %v212_v10  ;;  %216 = vadd.xlane.f32.xlu0 %v215_v24  ;;  %v356_v24 = vand.u32 65535, %v1393_v58 }
  0xc8   :  { %219 = vadd.xlane.f32.xlu1 %v218_v13  ;;  %222 = vadd.xlane.f32.xlu0 %v221_v25  ;;  %v386_v13 = vand.u32 65535, %v1415_v7  ;;  %v373_v25 = vcvt.s32.f32 %v371_v22  ;;  %v416_v7 = vand.u32 65535, %v1442_v0 }
  0xca   :  { %v388_v43 = vcvt.s32.f32 %v386_v13 }
  0xcc   :  { %225 = vadd.xlane.f32.xlu1 %v224_v3  ;;  %228 = vadd.xlane.f32.xlu0 %v227_v34  ;;  %v418_v34 = vcvt.s32.f32 %v416_v7 }
  0xd0   :  { %231 = vadd.xlane.f32.xlu1 %v230_v28 }
  0xd4   :  { %234 = vadd.xlane.f32.xlu1 %v233_v4  ;;  %v461_v4 = vand.u32 65535, %v1491_v6  ;;  %v491_v6 = vand.u32 65535, %v1516_v35  ;;  %v521_v35 = vand.u32 65535, %v1528_v55 }
  0xd6   :  { %v463_v29 = vcvt.s32.f32 %v461_v4  ;;  %v493_v26 = vcvt.s32.f32 %v491_v6 }
  0xd8   :  { %237 = vadd.xlane.f32.xlu1 %v236_v48 }
  0xdc   :  { %240 = vadd.xlane.f32.xlu1 %v239_v20 }
 0x125   :  { %v1575_v12 = vpop.xlane.xlu0 %300 }
 0x126   :  { %vm302_vm2 = vcmp.eq.f32.partialorder %v1362_v44, %v1575_v12 }
 0x127   :  { %v303_v57 = vsel %vm302_vm2, %v298_v21, inf }
 0x128   :  { %304 = vmin.xlane.f32.xlu0 %v303_v57 }
 0x129   :  { %v1581_v61 = vpop.xlane.xlu0 %330  ;;  %v1585_v38 = vpop.xlane.xlu1 %315 }
 0x12a   :  { %vm332_vm3 = vcmp.eq.f32.partialorder %v1382_v52, %v1581_v61  ;;  %vm317_vm4 = vcmp.eq.f32.partialorder %v1395_v59, %v1585_v38  ;;  %v358_v52 = vcvt.s32.f32 %v356_v24 }
 0x12b   :  { %v333_v10 = vsel %vm332_vm3, %v328_v5, inf  ;;  %v318_v44 = vsel %vm317_vm4, %v313_v14, inf }
 0x12c   :  { %334 = vmin.xlane.f32.xlu0 %v333_v10  ;;  %319 = vmin.xlane.f32.xlu1 %v318_v44  ;;  %v523_v10 = vcvt.s32.f32 %v521_v35  ;;  %v1657_v44 = vld [vmem:[%s2092_s0] ss:$0 sm:$0xff] }
 0x12d   :  { %v1591_v49 = vpop.xlane.xlu1 %345  ;;  %v1593_v41 = vpop.xlane.xlu0 %360 }
 0x12e   :  { %vm347_vm5 = vcmp.eq.f32.partialorder %v1406_v62, %v1591_v49  ;;  %vm362_vm6 = vcmp.eq.f32.partialorder %v1418_v11, %v1593_v41 }
 0x12f   :  { %v348_v50 = vsel %vm347_vm5, %v343_v15, inf  ;;  %v363_v58 = vsel %vm362_vm6, %v358_v52, inf  ;;  %v1662_v15 = vld [vmem:[%s2093_s1] ss:$0 sm:$0xff] }
 0x130   :  { %349 = vmin.xlane.f32.xlu1 %v348_v50  ;;  %364 = vmin.xlane.f32.xlu0 %v363_v58 }
 0x131   :  { %v1601_v59 = vpop.xlane.xlu1 %375  ;;  %v1603_v30 = vpop.xlane.xlu0 %390 }
 0x132   :  { %vm377_vm7 = vcmp.eq.f32.partialorder %v1429_v18, %v1601_v59  ;;  %vm392_vm8 = vcmp.eq.f32.partialorder %v1445_v31, %v1603_v30  ;;  %v446_v18 = vand.u32 65535, %v1471_v54 }
 0x133   :  { %v378_v62 = vsel %vm377_vm7, %v373_v25, inf  ;;  %v393_v11 = vsel %vm392_vm8, %v388_v43, inf }
 0x134   :  { %379 = vmin.xlane.f32.xlu1 %v378_v62  ;;  %394 = vmin.xlane.f32.xlu0 %v393_v11  ;;  %v448_v45 = vcvt.s32.f32 %v446_v18  ;;  %v2097_v11 = vmov 1.0|1.0  }
 0x135   :  { %v1611_v16 = vpop.xlane.xlu1 %405  ;;  %v1613_v3 = vpop.xlane.xlu0 %420 }
 0x136   :  { %vm407_vm9 = vcmp.eq.f32.partialorder %v1466_v51, %v1611_v16  ;;  %vm422_vm10 = vcmp.eq.f32.partialorder %v1468_v53, %v1613_v3  ;;  %v476_v51 = vand.u32 65535, %v1508_v1  ;;  %v506_v1 = vand.u32 65535, %v1522_v37 }
 0x137   :  { %v408_v0 = vsel %vm407_vm9, %v403_v32, inf  ;;  %v423_v31 = vsel %vm422_vm10, %v418_v34, inf  ;;  %v1193_v37 = vmov 0  }
 0x138   :  { %409 = vmin.xlane.f32.xlu1 %v408_v0  ;;  %424 = vmin.xlane.f32.xlu0 %v423_v31 }
 0x139   :  { %v1621_v28 = vpop.xlane.xlu1 %435  ;;  %v1624_v9 = vpop.xlane.xlu0 %450  ;;  %1115 = vset.pattern.permute.xlu0 %v1193_v37  ;;  %1121 = vset.pattern.permute.xlu1 %v1193_v37 }
 0x13a   :  { %vm437_vm11 = vcmp.eq.f32.partialorder %v1494_v47, %v1621_v28  ;;  %vm452_vm12 = vcmp.eq.f32.partialorder %v1500_v19, %v1624_v9  ;;  %v478_v47 = vcvt.s32.f32 %v476_v51 }
 0x13b   :  { %v438_v53 = vsel %vm437_vm11, %v433_v40, inf  ;;  %v453_v54 = vsel %vm452_vm12, %v448_v45, inf }
 0x13c   :  { %439 = vmin.xlane.f32.xlu1 %v438_v53  ;;  %454 = vmin.xlane.f32.xlu0 %v453_v54 }
 0x13d   :  { %v1631_v48 = vpop.xlane.xlu1 %465  ;;  %v1634_v20 = vpop.xlane.xlu0 %480 }
 0x13e   :  { %vm467_vm13 = vcmp.eq.f32.partialorder %v1518_v36, %v1631_v48  ;;  %vm482_vm14 = vcmp.eq.f32.partialorder %v1524_v46, %v1634_v20  ;;  %v508_v36 = vcvt.s32.f32 %v506_v1 }
 0x13f   :  { %v468_v23 = vsel %vm467_vm13, %v463_v29, inf  ;;  %v483_v19 = vsel %vm482_vm14, %v478_v47, inf }
 0x140   :  { %469 = vmin.xlane.f32.xlu1 %v468_v23  ;;  %484 = vmin.xlane.f32.xlu0 %v483_v19 }
 0x141   :  { %v1641_v21 = vpop.xlane.xlu1 %495  ;;  %v1644_v57 = vpop.xlane.xlu0 %510 }
 0x142   :  { %vm497_vm15 = vcmp.eq.f32.partialorder %v1533_v39, %v1641_v21  ;;  %vm512_vm1 = vcmp.eq.f32.partialorder %v1539_v8, %v1644_v57 }
 0x143   :  { %v498_v2 = vsel %vm497_vm15, %v493_v26, inf  ;;  %v513_v46 = vsel %vm512_vm1, %v508_v36, inf }
 0x144   :  { %499 = vmin.xlane.f32.xlu1 %v498_v2  ;;  %514 = vmin.xlane.f32.xlu0 %v513_v46 }
 0x145   :  { %v1650_v5 = vpop.xlane.xlu1 %525  ;;  %v199_v55 = vpop.xlane.xlu0 %198 }
 0x146   :  { %vm527_vm2 = vcmp.eq.f32.partialorder %v1544_v56, %v1650_v5  ;;  %1157 = vrcp.f32 %v199_v55 }
 0x147   :  { %v528_v39 = vsel %vm527_vm2, %v523_v10, inf }
 0x148   :  { %529 = vmin.xlane.f32.xlu1 %v528_v39 }
 0x149   :  { %v202_v14 = vpop.xlane.xlu1 %201  ;;  %v205_v42 = vpop.xlane.xlu0 %204 }
 0x14a   :  { %1159 = vrcp.f32 %v202_v14 }
 0x14b   :  { %1161 = vrcp.f32 %v205_v42 }
 0x14d   :  { %v208_v8 = vpop.xlane.xlu1 %207  ;;  %v211_v24 = vpop.xlane.xlu0 %210 }
 0x14e   :  { %1163 = vrcp.f32 %v208_v8 }
 0x14f   :  { %1165 = vrcp.f32 %v211_v24 }
 0x150   :  { %v1158_v56 = vpop.eup %1157 }
 0x151   :  { %v214_v52 = vpop.xlane.xlu1 %213  ;;  %vm589_vm3 = vcmp.gt.f32.partialorder %v1158_v56, %v1657_v44  ;;  %vm611_vm4 = vcmp.le.f32.partialorder %v1158_v56, %v1662_v15  ;;  %v217_v22 = vpop.xlane.xlu0 %216 }
 0x152   :  { %1167 = vrcp.f32 %v214_v52  ;;  %vm627_vm7 = vmand %vm589_vm3, %vm611_vm4 }
 0x153   :  { %1169 = vrcp.f32 %v217_v22 }
 0x154   :  { %v1160_v13 = vpop.eup %1159 }
 0x155   :  { %v1162_v50 = vpop.eup %1161  ;;  %vm590_vm5 = vcmp.gt.f32.partialorder %v1160_v13, %v1657_v44  ;;  %vm612_vm6 = vcmp.le.f32.partialorder %v1160_v13, %v1662_v15  ;;  %v220_v58 = vpop.xlane.xlu1 %219  ;;  %v1668_v25 = vpack.c.bf16 %v1160_v13, %v1158_v56 }
 0x156   :  { %vm628_vm8 = vmand %vm590_vm5, %vm612_vm6  ;;  %vm591_vm9 = vcmp.gt.f32.partialorder %v1162_v50, %v1657_v44  ;;  %vm613_vm10 = vcmp.le.f32.partialorder %v1162_v50, %v1662_v15  ;;  %1171 = vrcp.f32 %v220_v58  ;;  %v223_v43 = vpop.xlane.xlu0 %222 }
 0x157   :  { %vm1087_vm11 = vmpackc.low %vm628_vm8, %vm627_vm7  ;;  %1173 = vrcp.f32 %v223_v43  ;;  %v684_v60 = vunpack.c.h.bf16 %v1668_v25  ;;  %v683_v7 = vunpack.c.l.bf16 %v1668_v25 }
 0x158   :  { %v1164_v62 = vpop.eup %1163  ;;  %1088 = vmatpush3.bf16.msk.msra.mxu0 %vm1087_vm11, %v2097_v11  ;;  %vm1675_vm12 = vmand %vm591_vm9, %vm613_vm10 }
 0x159   :  { %v1166_v34 = vpop.eup %1165  ;;  %1089 = vmatprep.subr.bf16.mxu0 %v1192_v17  ;;  %vm592_vm13 = vcmp.gt.f32.partialorder %v1164_v62, %v1657_v44  ;;  %vm614_vm14 = vcmp.le.f32.partialorder %v1164_v62, %v1662_v15  ;;  %v226_v27 = vpop.xlane.xlu1 %225  ;;  %v1684_v18 = vsub.f32 %v1160_v13, %v684_v60  ;;  %v1686_v0 = vpack.c.bf16 %v1164_v62, %v1162_v50 }
 0x15a   :  { %vm630_vm15 = vmand %vm592_vm13, %vm614_vm14  ;;  %1175 = vrcp.f32 %v226_v27  ;;  %vm593_vm1 = vcmp.gt.f32.partialorder %v1166_v34, %v1657_v44  ;;  %vm615_vm2 = vcmp.le.f32.partialorder %v1166_v34, %v1662_v15  ;;  %v229_v31 = vpop.xlane.xlu0 %228  ;;  %v1692_v40 = vsub.f32 %v1158_v56, %v683_v7 }
 0x15b   :  { %vm1090_vm3 = vmpackc.low %vm630_vm15, %vm1675_vm12  ;;  %1177 = vrcp.f32 %v229_v31  ;;  %v685_v4 = vunpack.c.l.bf16 %v1686_v0  ;;  %v686_v45 = vunpack.c.h.bf16 %v1686_v0 }
 0x15c   :  { %v1168_v51 = vpop.eup %1167  ;;  %1091 = vmatpush3.bf16.msk.msra.mxu0 %vm1090_vm3, %v2097_v11  ;;  %vm1699_vm4 = vmand %vm593_vm1, %vm615_vm2 }
 0x15d   :  { %v1170_v54 = vpop.eup %1169  ;;  %1092 = vmatprep.subr.bf16.mxu0 %v1192_v17  ;;  %vm594_vm5 = vcmp.gt.f32.partialorder %v1168_v51, %v1657_v44  ;;  %vm616_vm6 = vcmp.le.f32.partialorder %v1168_v51, %v1662_v15  ;;  %v232_v29 = vpop.xlane.xlu1 %231  ;;  %v1708_v6 = vsub.f32 %v1162_v50, %v685_v4  ;;  %v1712_v47 = vsub.f32 %v1164_v62, %v686_v45 }
 0x15e   :  { %vm632_vm7 = vmand %vm594_vm5, %vm616_vm6  ;;  %1179 = vrcp.f32 %v232_v29  ;;  %vm595_vm8 = vcmp.gt.f32.partialorder %v1170_v54, %v1657_v44  ;;  %vm617_vm9 = vcmp.le.f32.partialorder %v1170_v54, %v1662_v15  ;;  %v1716_v1 = vpack.c.bf16 %v1168_v51, %v1166_v34 }
 0x15f   :  { %vm1093_vm10 = vmpackc.low %vm632_vm7, %vm1699_vm4 }
 0x160   :  { %v1172_v23 = vpop.eup %1171  ;;  %1094 = vmatpush3.bf16.msk.msra.mxu0 %vm1093_vm10, %v2097_v11  ;;  %vm1721_vm11 = vmand %vm595_vm8, %vm617_vm9  ;;  %v687_v26 = vunpack.c.l.bf16 %v1716_v1  ;;  %v2098_v35 = vunpack.c.h.bf16 %v1716_v1 }
 0x161   :  { %v1174_v36 = vpop.eup %1173  ;;  %1095 = vmatprep.subr.bf16.mxu0 %v1192_v17  ;;  %vm596_vm12 = vcmp.gt.f32.partialorder %v1172_v23, %v1657_v44  ;;  %vm618_vm13 = vcmp.le.f32.partialorder %v1172_v23, %v1662_v15  ;;  %v235_v2 = vpop.xlane.xlu1 %234  ;;  %v1730_v37 = vpack.c.bf16 %v1172_v23, %v1170_v54 }
 0x162   :  { %vm634_vm14 = vmand %vm596_vm12, %vm618_vm13  ;;  %1181 = vrcp.f32 %v235_v2  ;;  %vm597_vm15 = vcmp.gt.f32.partialorder %v1174_v36, %v1657_v44  ;;  %vm619_vm1 = vcmp.le.f32.partialorder %v1174_v36, %v1662_v15  ;;  %v1736_v46 = vsub.f32 %v1166_v34, %v687_v26 }
 0x163   :  { %vm1096_vm2 = vmpackc.low %vm634_vm14, %vm1721_vm11  ;;  %v689_v10 = vunpack.c.l.bf16 %v1730_v37  ;;  %v2104_v55 = vunpack.c.h.bf16 %v1730_v37  ;;  %v1744_v39 = vsub.f32 %v1168_v51, %v2098_v35 }
 0x164   :  { %v1176_v14 = vpop.eup %1175  ;;  %1097 = vmatpush3.bf16.msk.msra.mxu0 %vm1096_vm2, %v2097_v11  ;;  %vm1747_vm3 = vmand %vm597_vm15, %vm619_vm1 }
 0x165   :  { %v1178_v8 = vpop.eup %1177  ;;  %v238_v24 = vpop.xlane.xlu1 %237  ;;  %1098 = vmatprep.subr.bf16.mxu0 %v1192_v17  ;;  %vm598_vm4 = vcmp.gt.f32.partialorder %v1176_v14, %v1657_v44  ;;  %vm620_vm5 = vcmp.le.f32.partialorder %v1176_v14, %v1662_v15  ;;  %v1756_v56 = vsub.f32 %v1170_v54, %v689_v10  ;;  %v1760_v52 = vsub.f32 %v1172_v23, %v2104_v55 }
 0x166   :  { %1183 = vrcp.f32 %v238_v24  ;;  %vm636_vm6 = vmand %vm598_vm4, %vm620_vm5  ;;  %vm599_vm7 = vcmp.gt.f32.partialorder %v1178_v8, %v1657_v44  ;;  %vm621_vm8 = vcmp.le.f32.partialorder %v1178_v8, %v1662_v15  ;;  %v1764_v22 = vpack.c.bf16 %v1176_v14, %v1174_v36 }
 0x167   :  { %vm1099_vm9 = vmpackc.low %vm636_vm6, %vm1747_vm3 }
 0x168   :  { %v1180_v13 = vpop.eup %1179  ;;  %1100 = vmatpush3.bf16.msk.msra.mxu0 %vm1099_vm9, %v2097_v11  ;;  %vm637_vm10 = vmand %vm599_vm7, %vm621_vm8  ;;  %v2103_v50 = vunpack.c.l.bf16 %v1764_v22  ;;  %v2102_v58 = vunpack.c.h.bf16 %v1764_v22 }
 0x169   :  { %1101 = vmatprep.subr.bf16.mxu0 %v1192_v17  ;;  %vm600_vm11 = vcmp.gt.f32.partialorder %v1180_v13, %v1657_v44  ;;  %vm622_vm12 = vcmp.le.f32.partialorder %v1180_v13, %v1662_v15  ;;  %v1774_v43 = vpack.c.bf16 %v1180_v13, %v1178_v8  ;;  %v1815_v24 = vpop.xlane.xlu1 %240 }
 0x16a   :  { %vm638_vm13 = vmand %vm600_vm11, %vm622_vm12  ;;  %v1778_v62 = vsub.f32 %v1174_v36, %v2103_v50  ;;  %v1782_v32 = vsub.f32 %v1176_v14, %v2102_v58  ;;  %v307_v14 = vcvt.f32.s32 %v1575_v12  ;;  %v352_v12 = vcvt.f32.s32 %v1591_v49 }
 0x16b   :  { %vm1102_vm14 = vmpackc.low %vm638_vm13, %vm637_vm10  ;;  %v2101_v34 = vunpack.c.l.bf16 %v1774_v43  ;;  %v2096_v27 = vunpack.c.h.bf16 %v1774_v43  ;;  %v367_v58 = vcvt.f32.s32 %v1593_v41  ;;  %v87_v41 = vld [vmem:[%s2094_s3 + $0x18] sm:$0xff]  ;;  %v1195_v50 = vmov 0.0  }
 0x16c   :  { %v1182_v31 = vpop.eup %1181  ;;  %1103 = vmatpush3.bf16.msk.msra.mxu0 %vm1102_vm14, %v2097_v11 }
 0x16d   :  { %1104 = vmatprep.subr.bf16.mxu0 %v1192_v17  ;;  %vm601_vm15 = vcmp.gt.f32.partialorder %v1182_v31, %v1657_v44  ;;  %vm623_vm1 = vcmp.le.f32.partialorder %v1182_v31, %v1662_v15  ;;  %v1792_v51 = vsub.f32 %v1178_v8, %v2101_v34  ;;  %v1796_v53 = vsub.f32 %v1180_v13, %v2096_v27 }
 0x16e   :  { %vm639_vm2 = vmand %vm601_vm15, %vm623_vm1  ;;  %v308_v13 = vshll.u32 %v307_v14, 16  ;;  %v322_v27 = vcvt.f32.s32 %v1585_v38  ;;  %v85_v38 = vld [vmem:[%s2094_s3 + $0x8] sm:$0xff] }
 0x170   :  { %v1184_v54 = vpop.eup %1183 }
 0x171   :  { %vm602_vm3 = vcmp.gt.f32.partialorder %v1184_v54, %v1657_v44  ;;  %vm624_vm4 = vcmp.le.f32.partialorder %v1184_v54, %v1662_v15  ;;  %v1800_v29 = vpack.c.bf16 %v1184_v54, %v1182_v31 }
 0x172   :  { %vm640_vm5 = vmand %vm602_vm3, %vm624_vm4 }
 0x173   :  { %vm1105_vm6 = vmpackc.low %vm640_vm5, %vm639_vm2  ;;  %v2099_v23 = vunpack.c.l.bf16 %v1800_v29  ;;  %v2100_v19 = vunpack.c.h.bf16 %v1800_v29 }
 0x174   :  { %1106 = vmatpush3.bf16.msk.msra.mxu0 %vm1105_vm6, %v2097_v11  ;;  %v337_v11 = vcvt.f32.s32 %v1581_v61 }
 0x175   :  { %v1807_v36 = vsub.f32 %v1182_v31, %v2099_v23  ;;  %1107 = vmatprep.subr.bf16.mxu0 %v1192_v17  ;;  %v1812_v2 = vsub.f32 %v1184_v54, %v2100_v19  ;;  %v84_v17 = vld [vmem:[%s2094_s3] sm:$0xff]  ;;  %v323_v19 = vshll.u32 %v322_v27, 16  ;;  %v353_v27 = vshll.u32 %v352_v12, 16 }
 0x176   :  { %v338_v34 = vshll.u32 %v337_v11, 16 }
 0x1b5   :  { %v305_v42 = vpop.xlane.xlu0 %304 }
 0x1b6   :  { %v306_v8 = vcvt.f32.s32 %v305_v42 }
 0x1b8   :  { %v309_v31 = vadd.s32 %v308_v13, %v306_v8 }
 0x1b9   :  { %v335_v35 = vpop.xlane.xlu0 %334  ;;  %v320_v54 = vpop.xlane.xlu1 %319 }
 0x1ba   :  { %v336_v23 = vcvt.f32.s32 %v335_v35  ;;  %v321_v42 = vcvt.f32.s32 %v320_v54  ;;  %vm535_vm7 = vcmp.eq.s32.totalorder %v309_v31, %v84_v17  ;;  %v86_v35 = vld [vmem:[%s2094_s3 + $0x10] sm:$0xff]  ;;  %v368_v54 = vshll.u32 %v367_v58, 16 }
 0x1bb   :  { %v984_v31 = vsel %vm535_vm7, 1.0, %v1195_v50  ;;  %vm1196_vm7 = vmmov 0  }
 0x1bc   :  { %v324_v61 = vadd.s32 %v323_v19, %v321_v42  ;;  %v339_v14 = vadd.s32 %v338_v34, %v336_v23  ;;  %v397_v23 = vcvt.f32.s32 %v1603_v30  ;;  %v412_v30 = vcvt.f32.s32 %v1611_v16  ;;  %v1191_v16 = vld [vmem:[%s2091_s2 + $0x78] sm:$0xff]  ;;  %1083 = vmatprep.mubr.msk.f32.mxu0 %vm1196_vm7, %v1195_v50 }
 0x1bd   :  { %v350_v8 = vpop.xlane.xlu1 %349  ;;  %v365_v13 = vpop.xlane.xlu0 %364 }
 0x1be   :  { %vm536_vm8 = vcmp.eq.s32.totalorder %v324_v61, %v85_v38  ;;  %v351_v11 = vcvt.f32.s32 %v350_v8  ;;  %v366_v49 = vcvt.f32.s32 %v365_v13  ;;  %vm537_vm9 = vcmp.eq.s32.totalorder %v339_v14, %v86_v35  ;;  %v88_v13 = vld [vmem:[%s2094_s3 + $0x20] sm:$0xff] }
 0x1bf   :  { %v985_v34 = vsel %vm536_vm8, 1.0, %v1195_v50  ;;  %v986_v61 = vsel %vm537_vm9, 1.0, %v1195_v50  ;;  %v398_v55 = vshll.u32 %v397_v23, 16  ;;  %vm718_vm8 = vcmp.eq.s32.totalorder %v1334_v33, 3 }
 0x1c0   :  { %v354_v19 = vadd.s32 %v353_v27, %v351_v11  ;;  %v1116_v17 = vpack.i.bf16 %v985_v34, %v984_v31  ;;  %v369_v38 = vadd.s32 %v368_v54, %v366_v49  ;;  %v90_v49 = vld [vmem:[%s2094_s3 + $0x30] sm:$0xff]  ;;  %v413_v54 = vshll.u32 %v412_v30, 16 }
 0x1c1   :  { %v1836_v42 = vpop.xlane.xlu1 %379  ;;  %v395_v12 = vpop.xlane.xlu0 %394  ;;  %vm717_vm9 = vcmp.eq.s32.totalorder %v1334_v33, 2 }
 0x1c2   :  { %vm538_vm10 = vcmp.eq.s32.totalorder %v354_v19, %v87_v41  ;;  %v396_v58 = vcvt.f32.s32 %v395_v12  ;;  %1117 = vperm.xlu0 %1115, %v1116_v17   ;;  %vm539_vm11 = vcmp.eq.s32.totalorder %v369_v38, %v88_v13  ;;  %v427_v41 = vcvt.f32.s32 %v1613_v3  ;;  %v91_v38 = vld [vmem:[%s2094_s3 + $0x38] sm:$0xff] }
 0x1c3   :  { %v987_v8 = vsel %vm538_vm10, 1.0, %v1195_v50  ;;  %v988_v34 = vsel %vm539_vm11, 1.0, %v1195_v50  ;;  %v442_v3 = vcvt.f32.s32 %v1621_v28  ;;  %v93_v28 = vld [vmem:[%s2094_s3 + $0x48] sm:$0xff]  ;;  %vm716_vm10 = vcmp.eq.s32.totalorder %v1334_v33, 1 }
 0x1c4   :  { %v1122_v14 = vpack.i.bf16 %v987_v8, %v986_v61  ;;  %v399_v11 = vadd.s32 %v398_v55, %v396_v58  ;;  %v164_v55 = vsub.f32 %v1191_v16, %v1488_v63  ;;  %v428_v58 = vshll.u32 %v427_v41, 16  ;;  %v92_v63 = vld [vmem:[%s2094_s3 + $0x40] sm:$0xff]  ;;  %v94_v16 = vld [vmem:[%s2094_s3 + $0x50] sm:$0xff] }
 0x1c5   :  { %v410_v35 = vpop.xlane.xlu1 %409  ;;  %v425_v27 = vpop.xlane.xlu0 %424  ;;  %v487_v41 = vcvt.f32.s32 %v1634_v20  ;;  %v96_v20 = vld [vmem:[%s2094_s3 + $0x60] sm:$0xff]  ;;  %vm715_vm11 = vcmp.eq.s32.totalorder %v1334_v33, 0 }
 0x1c6   :  { %v411_v31 = vcvt.f32.s32 %v410_v35  ;;  %1123 = vperm.xlu1 %1121, %v1122_v14   ;;  %v426_v23 = vcvt.f32.s32 %v425_v27  ;;  %vm541_vm12 = vcmp.eq.s32.totalorder %v399_v11, %v90_v49  ;;  %v195_v30 = vmul.f32 1.442695, %v164_v55 }
 0x1c7   :  { %v990_v61 = vsel %vm541_vm12, 1.0, %v1195_v50  ;;  %v443_v14 = vshll.u32 %v442_v3, 16  ;;  %v457_v35 = vcvt.f32.s32 %v1624_v9  ;;  %v488_v55 = vshll.u32 %v487_v41, 16 }
 0x1c8   :  { %v414_v19 = vadd.s32 %v413_v54, %v411_v31  ;;  %v429_v8 = vadd.s32 %v428_v58, %v426_v23  ;;  %1185 = vpow2.f32 %v195_v30 }
 0x1c9   :  { %v440_v17 = vpop.xlane.xlu1 %439  ;;  %v455_v12 = vpop.xlane.xlu0 %454  ;;  %v458_v54 = vshll.u32 %v457_v35, 16  ;;  %1187 = vrcp.f32 %v1815_v24 }
 0x1ca   :  { %741 = vperm.xlu1 %1121, %v988_v34   ;;  %v441_v13 = vcvt.f32.s32 %v440_v17  ;;  %vm542_vm13 = vcmp.eq.s32.totalorder %v414_v19, %v91_v38  ;;  %v456_v49 = vcvt.f32.s32 %v455_v12  ;;  %vm543_vm14 = vcmp.eq.s32.totalorder %v429_v8, %v92_v63 }
 0x1cb   :  { %v991_v11 = vsel %vm542_vm13, 1.0, %v1195_v50  ;;  %v992_v34 = vsel %vm543_vm14, 1.0, %v1195_v50  ;;  %v517_v17 = vcvt.f32.s32 %v1644_v57  ;;  %v98_v57 = vld [vmem:[%s2094_s3 + $0x70] sm:$0xff] }
 0x1cc   :  { %v444_v31 = vadd.s32 %v443_v14, %v441_v13  ;;  %v459_v19 = vadd.s32 %v458_v54, %v456_v49  ;;  %v472_v49 = vcvt.f32.s32 %v1631_v48  ;;  %v532_v48 = vcvt.f32.s32 %v1650_v5  ;;  %v99_v5 = vld [vmem:[%s2094_s3 + $0x78] sm:$0xff] }
 0x1cd   :  { %v485_v27 = vpop.xlane.xlu0 %484  ;;  %v518_v3 = vshll.u32 %v517_v17, 16  ;;  %v470_v35 = vpop.xlane.xlu1 %469 }
 0x1ce   :  { %751 = vperm.xlu1 %1121, %v990_v61   ;;  %v486_v23 = vcvt.f32.s32 %v485_v27  ;;  %vm544_vm15 = vcmp.eq.s32.totalorder %v444_v31, %v93_v28  ;;  %vm545_vm1 = vcmp.eq.s32.totalorder %v459_v19, %v94_v16  ;;  %v382_v27 = vcvt.f32.s32 %v1601_v59  ;;  %v95_v59 = vld [vmem:[%s2094_s3 + $0x58] sm:$0xff] }
 0x1cf   :  { %v993_v12 = vsel %vm544_vm15, 1.0, %v1195_v50  ;;  %v994_v8 = vsel %vm545_vm1, 1.0, %v1195_v50  ;;  %v471_v41 = vcvt.f32.s32 %v470_v35  ;;  %v473_v19 = vshll.u32 %v472_v49, 16 }
 0x1d0   :  { %v489_v38 = vadd.s32 %v488_v55, %v486_v23  ;;  %v383_v31 = vshll.u32 %v382_v27, 16  ;;  %v502_v23 = vcvt.f32.s32 %v1641_v21  ;;  %v97_v21 = vld [vmem:[%s2094_s3 + $0x68] sm:$0xff] }
 0x1d1   :  { %v515_v9 = vpop.xlane.xlu0 %514  ;;  %v500_v28 = vpop.xlane.xlu1 %499 }
 0x1d2   :  { %756 = vperm.xlu1 %1121, %v991_v11   ;;  %v516_v58 = vcvt.f32.s32 %v515_v9  ;;  %v1186_v61 = vpop.eup %1185  ;;  %vm547_vm2 = vcmp.eq.s32.totalorder %v489_v38, %v96_v20  ;;  %v381_v11 = vcvt.f32.s32 %v1836_v42  ;;  %v474_v9 = vadd.s32 %v473_v19, %v471_v41 }
 0x1d3   :  { %v242_v30 = vsel %vm100_vm0, %v1186_v61, 0.0  ;;  %v996_v63 = vsel %vm547_vm2, 1.0, %v1195_v50  ;;  %v501_v16 = vcvt.f32.s32 %v500_v28  ;;  %v503_v42 = vshll.u32 %v502_v23, 16 }
 0x1d4   :  { %v519_v13 = vadd.s32 %v518_v3, %v516_v58  ;;  %v384_v54 = vadd.s32 %v383_v31, %v381_v11  ;;  %vm546_vm4 = vcmp.eq.s32.totalorder %v474_v9, %v95_v59  ;;  %v533_v58 = vshll.u32 %v532_v48, 16 }
 0x1d5   :  { %v530_v55 = vpop.xlane.xlu1 %529  ;;  %v995_v20 = vsel %vm546_vm4, 1.0, %v1195_v50  ;;  %v2113_v59 = vunpack.c.h.bf16 %v1730_v37 }
 0x1d6   :  { %761 = vperm.xlu1 %1121, %v992_v34   ;;  %vm549_vm3 = vcmp.eq.s32.totalorder %v519_v13, %v98_v57  ;;  %v89_v34 = vld [vmem:[%s2094_s3 + $0x28] sm:$0xff]  ;;  %v531_v38 = vcvt.f32.s32 %v530_v55 }
 0x1d7   :  { %v998_v14 = vsel %vm549_vm3, 1.0, %v1195_v50  ;;  %vm540_vm0 = vcmp.eq.s32.totalorder %v384_v54, %v89_v34 }
 0x1d8   :  { %v989_v17 = vsel %vm540_vm0, 1.0, %v1195_v50  ;;  %v534_v3 = vadd.s32 %v533_v58, %v531_v38 }
 0x1da   :  { %766 = vperm.xlu1 %1121, %v993_v12   ;;  %v504_v12 = vadd.s32 %v503_v42, %v501_v16  ;;  %vm550_vm6 = vcmp.eq.s32.totalorder %v534_v3, %v99_v5 }
 0x1dc   :  { %vm548_vm5 = vcmp.eq.s32.totalorder %v504_v12, %v97_v21  ;;  %v2114_v12 = vunpack.c.l.bf16 %v1764_v22 }
 0x1dd   :  { %v997_v61 = vsel %vm548_vm5, 1.0, %v1195_v50 }
 0x1de   :  { %771 = vperm.xlu1 %1121, %v994_v8   ;;  %v999_v8 = vsel %vm550_vm6, 1.0, %v1195_v50 }
 0x1e1   :  { %243 = vadd.xlane.f32.xlu0 %v242_v30 }
 0x1e2   :  { %781 = vperm.xlu1 %1121, %v996_v63  }
 0x1e6   :  { %791 = vperm.xlu1 %1121, %v998_v14  }
 0x1f7   :  { %746 = vperm.xlu0 %1115, %v989_v17  }
 0x1fb   :  { %776 = vperm.xlu0 %1115, %v995_v20  }
 0x1ff   :  { %786 = vperm.xlu0 %1115, %v997_v61  }
 0x203   :  { %796 = vperm.xlu0 %1115, %v999_v8  }
 0x241   :  { %v1118_v13 = vpop.permute.xlu0 %1117 }
 0x242   :  { %v1120_v57 = vunpack.i.h.bf16 %v1118_v13  ;;  %v1119_v30 = vunpack.i.l.bf16 %v1118_v13  ;;  %v2116_v13 = vunpack.c.l.bf16 %v1774_v43 }
 0x244   :  { %v800_v63 = vsel %vm718_vm8, %v1120_v57, 0.0  ;;  %v799_v14 = vsel %vm718_vm8, %v1119_v30, 0.0 }
 0x245   :  { %v816_v50 = vsel %vm717_vm9, %v1684_v18, %v800_v63  ;;  %v1124_v35 = vpop.permute.xlu1 %1123  ;;  %v815_v27 = vsel %vm717_vm9, %v1692_v40, %v799_v14  ;;  %v2117_v14 = vunpack.c.l.bf16 %v1800_v29 }
 0x246   :  { %v1126_v11 = vunpack.i.h.bf16 %v1124_v35  ;;  %v1125_v31 = vunpack.i.l.bf16 %v1124_v35  ;;  %v831_v49 = vsel %vm716_vm10, %v683_v7, %v815_v27  ;;  %v832_v28 = vsel %vm716_vm10, %v684_v60, %v816_v50  ;;  %v1188_v27 = vpop.eup %1187 }
 0x247   :  { %v847_v18 = vsel %vm715_vm11, 1.0, %v831_v49  ;;  %vm603_vm12 = vcmp.gt.f32.partialorder %v1188_v27, %v1657_v44  ;;  %vm625_vm13 = vcmp.le.f32.partialorder %v1188_v27, %v1662_v15 }
 0x248   :  { %v802_v54 = vsel %vm718_vm8, %v1126_v11, 0.0  ;;  %v801_v40 = vsel %vm718_vm8, %v1125_v31, 0.0  ;;  %863 = vxpose.xlu1.b32.start [1/16] (narrow) %v847_v18, 8  ;;  %vm641_vm1 = vmand %vm603_vm12, %vm625_vm13 }
 0x249   :  { %v818_v41 = vsel %vm717_vm9, %v1712_v47, %v802_v54  ;;  %v817_v25 = vsel %vm717_vm9, %v1708_v6, %v801_v40  ;;  %v742_v7 = vpop.permute.xlu1 %741  ;;  %v848_v6 = vsel %vm715_vm11, 1.0, %v832_v28  ;;  %v2118_v28 = vunpack.c.h.bf16 %v1716_v1 }
 0x24a   :  { %v803_v60 = vsel %vm718_vm8, %v742_v7, 0.0  ;;  %v833_v34 = vsel %vm716_vm10, %v685_v4, %v817_v25  ;;  %v834_v19 = vsel %vm716_vm10, %v686_v45, %v818_v41  ;;  %v2119_v7 = vmov 1.0|1.0  }
 0x24b   :  { %v819_v47 = vsel %vm717_vm9, %v1736_v46, %v803_v60  ;;  %v849_v45 = vsel %vm715_vm11, 1.0, %v833_v34 }
 0x24c   :  { %864 = vxpose.xlu1.b32.cont [2/16] (narrow) %v848_v6, 8  ;;  %v835_v23 = vsel %vm716_vm10, %v687_v26, %v819_v47 }
 0x24d   :  { %v752_v9 = vpop.permute.xlu1 %751 }
 0x24e   :  { %v805_v0 = vsel %vm718_vm8, %v752_v9, 0.0 }
 0x24f   :  { %v821_v4 = vsel %vm717_vm9, %v1756_v56, %v805_v0  ;;  %v850_v56 = vsel %vm715_vm11, 1.0, %v834_v19  ;;  %v2121_v0 = vunpack.c.h.bf16 %v1800_v29 }
 0x250   :  { %865 = vxpose.xlu1.b32.cont [3/16] (narrow) %v849_v45, 8  ;;  %v837_v46 = vsel %vm716_vm10, %v689_v10, %v821_v4 }
 0x251   :  { %v757_v16 = vpop.permute.xlu1 %756  ;;  %v853_v34 = vsel %vm715_vm11, 1.0, %v837_v46 }
 0x252   :  { %v806_v26 = vsel %vm718_vm8, %v757_v16, 0.0 }
 0x253   :  { %v822_v55 = vsel %vm717_vm9, %v1760_v52, %v806_v26  ;;  %v851_v52 = vsel %vm715_vm11, 1.0, %v835_v23 }
 0x254   :  { %866 = vxpose.xlu1.b32.cont [4/16] (narrow) %v850_v56, 8  ;;  %v838_v42 = vsel %vm716_vm10, %v2113_v59, %v822_v55 }
 0x255   :  { %v762_v48 = vpop.permute.xlu1 %761  ;;  %v854_v26 = vsel %vm715_vm11, 1.0, %v838_v42 }
 0x256   :  { %v807_v10 = vsel %vm718_vm8, %v762_v48, 0.0 }
 0x257   :  { %v823_v17 = vsel %vm717_vm9, %v1778_v62, %v807_v10  ;;  %v2115_v62 = vunpack.c.h.bf16 %v1764_v22 }
 0x258   :  { %867 = vxpose.xlu1.b32.cont [5/16] (narrow) %v851_v52, 8  ;;  %v1991_v37 = vsel %vm716_vm10, %v2114_v12, %v823_v17 }
 0x259   :  { %v767_v38 = vpop.permute.xlu1 %766  ;;  %v855_v42 = vsel %vm715_vm11, 1.0, %v1991_v37 }
 0x25a   :  { %v808_v21 = vsel %vm718_vm8, %v767_v38, 0.0 }
 0x25b   :  { %v824_v58 = vsel %vm717_vm9, %v1782_v32, %v808_v21 }
 0x25c   :  { %v840_v20 = vsel %vm716_vm10, %v2115_v62, %v824_v58 }
 0x25d   :  { %v772_v3 = vpop.permute.xlu1 %771  ;;  %v856_v5 = vsel %vm715_vm11, 1.0, %v840_v20 }
 0x25e   :  { %v809_v61 = vsel %vm718_vm8, %v772_v3, 0.0 }
 0x25f   :  { %v825_v8 = vsel %vm717_vm9, %v1792_v51, %v809_v61 }
 0x260   :  { %v841_v32 = vsel %vm716_vm10, %v2116_v13, %v825_v8 }
 0x261   :  { %v782_v22 = vpop.permute.xlu1 %781  ;;  %v857_v57 = vsel %vm715_vm11, 1.0, %v841_v32 }
 0x262   :  { %v811_v30 = vsel %vm718_vm8, %v782_v22, 0.0 }
 0x263   :  { %v827_v63 = vsel %vm717_vm9, %v1807_v36, %v811_v30 }
 0x264   :  { %v843_v51 = vsel %vm716_vm10, %v2117_v14, %v827_v63 }
 0x265   :  { %v859_v50 = vsel %vm715_vm11, 1.0, %v843_v51 }
 0x26e   :  { %v244_v35 = vpop.xlane.xlu0 %243 }
 0x26f   :  { %1189 = vrcp.f32 %v244_v35 }
 0x276   :  { %v747_v11 = vpop.permute.xlu0 %746 }
 0x277   :  { %v804_v31 = vsel %vm718_vm8, %v747_v11, 0.0 }
 0x278   :  { %v820_v36 = vsel %vm717_vm9, %v1744_v39, %v804_v31  ;;  %v792_v39 = vpop.permute.xlu1 %791 }
 0x279   :  { %v1190_v49 = vpop.eup %1189  ;;  %v836_v24 = vsel %vm716_vm10, %v2118_v28, %v820_v36 }
 0x27a   :  { %v777_v18 = vpop.permute.xlu0 %776  ;;  %v852_v54 = vsel %vm715_vm11, 1.0, %v836_v24  ;;  %vm604_vm14 = vcmp.gt.f32.partialorder %v1190_v49, %v1657_v44  ;;  %vm626_vm15 = vcmp.le.f32.partialorder %v1190_v49, %v1662_v15  ;;  %v682_v40 = vpack.c.bf16 %v1190_v49, %v1188_v27 }
 0x27b   :  { %v810_v41 = vsel %vm718_vm8, %v777_v18, 0.0  ;;  %868 = vxpose.xlu1.b32.cont [6/16] (narrow) %v852_v54, 8  ;;  %vm642_vm2 = vmand %vm604_vm14, %vm626_vm15  ;;  %v2120_v44 = vunpack.c.h.bf16 %v1774_v43 }
 0x27c   :  { %v826_v1 = vsel %vm717_vm9, %v1796_v53, %v810_v41  ;;  %vm1108_vm3 = vmpackc.low %vm642_vm2, %vm641_vm1  ;;  %v697_v25 = vunpack.c.l.bf16 %v682_v40  ;;  %v698_v19 = vunpack.c.h.bf16 %v682_v40  ;;  %v813_v53 = vsel %vm718_vm8, %v792_v39, 0.0 }
 0x27d   :  { %1109 = vmatpush3.bf16.msk.msra.mxu0 %vm1108_vm3, %v2119_v7  ;;  %v842_v15 = vsel %vm716_vm10, %v2120_v44, %v826_v1 }
 0x27e   :  { %v787_v60 = vpop.permute.xlu0 %786  ;;  %v858_v47 = vsel %vm715_vm11, 1.0, %v842_v15  ;;  %v713_v6 = vsub.f32 %v1188_v27, %v697_v25  ;;  %v714_v46 = vsub.f32 %v1190_v49, %v698_v19 }
 0x27f   :  { %v812_v23 = vsel %vm718_vm8, %v787_v60, 0.0  ;;  %869 = vxpose.xlu1.b32.cont [7/16] (narrow) %v853_v34, 8 }
 0x280   :  { %v828_v43 = vsel %vm717_vm9, %v1812_v2, %v812_v23  ;;  %v829_v9 = vsel %vm717_vm9, %v713_v6, %v813_v53 }
 0x281   :  { %v844_v4 = vsel %vm716_vm10, %v2121_v0, %v828_v43  ;;  %v845_v45 = vsel %vm716_vm10, %v697_v25, %v829_v9 }
 0x282   :  { %v797_v16 = vpop.permute.xlu0 %796  ;;  %v860_v55 = vsel %vm715_vm11, 1.0, %v844_v4  ;;  %v861_v2 = vsel %vm715_vm11, 1.0, %v845_v45 }
 0x283   :  { %v814_v29 = vsel %vm718_vm8, %v797_v16, 0.0  ;;  %870 = vxpose.xlu1.b32.cont [8/16] (narrow) %v854_v26, 8 }
 0x284   :  { %v830_v56 = vsel %vm717_vm9, %v714_v46, %v814_v29 }
 0x285   :  { %v846_v59 = vsel %vm716_vm10, %v698_v19, %v830_v56 }
 0x286   :  { %v862_v48 = vsel %vm715_vm11, 1.0, %v846_v59 }
 0x287   :  { %871 = vxpose.xlu1.b32.cont [9/16] (narrow) %v855_v42, 8 }
 0x28b   :  { %872 = vxpose.xlu1.b32.cont [10/16] (narrow) %v856_v5, 8 }
 0x28f   :  { %873 = vxpose.xlu1.b32.cont [11/16] (narrow) %v857_v57, 8 }
 0x293   :  { %874 = vxpose.xlu1.b32.cont [12/16] (narrow) %v858_v47, 8 }
 0x297   :  { %875 = vxpose.xlu1.b32.cont [13/16] (narrow) %v859_v50, 8 }
 0x29b   :  { %876 = vxpose.xlu1.b32.cont [14/16] (narrow) %v860_v55, 8 }
 0x29f   :  { %877 = vxpose.xlu1.b32.cont [15/16] (narrow) %v861_v2, 8 }
 0x2a3   :  { %878 = vxpose.xlu1.b32.end [16/16] (narrow) %v862_v48, 8 }
 0x2e7   :  { %v879_v10 = vpop.trf.xlu1 }
 0x2e8   :  { %1084 = vmatmul.mubr.f32.vlgmr.msra.gmra.mrb[0].mxu0 %v879_v10 }
 0x3bb   :  { %v961_v17 = vpop.f32.mrb[0].mxu0 }
 0x3bc   :  { %v1085_v52 = vpop.f32.mrb[1].mxu0  ;;  %967 = vst [vmem:[%s2095_s4] sm:$0xff] %v961_v17 }

</bundles_post_ra>
